<compile_context>
chip_gen: v7x
topology: tpu7x:2x2x1
jax: 0.10.0
libtpu: 0.0.40
codegen_flags: <defaults>
</compile_context>

<pallas_src>
import functools

import jax
import jax.numpy as jnp
from jax.experimental import pallas as pl
from jax.experimental.pallas import tpu as pltpu

_LANE = 128


def _round_up(x, m):
    return ((x + m - 1) // m) * m


def fused_affine_linear_kernel(coef_ref, x_ref, o_ref):
    """One (tile_r, 128) lane-dense tile.

    coef_ref : VMEM (8, 128) f32; rows 0..3 = c_self, c_prev, c_next, b_lane
               (128-periodic even/odd-lane coefficients; rows 4..7 unused).
    x_ref    : VMEM (tile_r, 128) f32; even lanes = feature 0, odd lanes = feature 1.
    o_ref    : VMEM (tile_r, 128) f32; outputs interleaved the same way.
    """
    v = x_ref[...]
    # XLU lane rotations (pltpu.roll follows jnp.roll: out[l] = in[(l - shift) % L]).
    v_prev = pltpu.roll(v, shift=1, axis=1)          # lane l <- lane l-1
    v_next = pltpu.roll(v, shift=_LANE - 1, axis=1)  # lane l <- lane l+1 (cyclic)
    c_self = coef_ref[0:1, :]
    c_prev = coef_ref[1:2, :]   # zero on even lanes -> wrapped v_prev never selected
    c_next = coef_ref[2:3, :]   # zero on odd  lanes -> wrapped v_next never selected
    b_lane = coef_ref[3:4, :]
    o_ref[...] = v * c_self + v_prev * c_prev + v_next * c_next + b_lane


@functools.partial(jax.jit, static_argnames=("tile_rows",))
def model_forward(x1, lin_w, lin_b, conv_w, conv_b, *, tile_rows=2048):
    """x1: (B, S, 2) float32. Returns (B, S, 2) float32 == Model.forward(x1)."""
    B, S, F_in = x1.shape
    F_out, F_in_w = lin_w.shape
    assert F_in == 2 and F_out == 2 and F_in_w == 2, "module fixes Linear(2, 2)"

    # ---- host-side algebraic folding (6 scalars, trace-time) ---------------
    cw = conv_w.reshape(())                        # Conv2d(1,1,(1,1)) weight -> scalar
    cb = conv_b.reshape(())
    a_eff = cw * lin_w.T                           # A[i, j]: y_j = sum_i x_i*A[i,j] + b_j
    b_eff = cb * jnp.sum(lin_w, axis=1) + lin_b    # (F_out,)

    # 128-periodic per-lane coefficient rows (3-tap form, baked into VMEM once).
    lane = jnp.arange(_LANE)
    even = (lane % 2) == 0
    c_self = jnp.where(even, a_eff[0, 0], a_eff[1, 1])
    c_prev = jnp.where(even, 0.0, a_eff[0, 1])
    c_next = jnp.where(even, a_eff[1, 0], 0.0)
    b_lane = jnp.where(even, b_eff[0], b_eff[1])
    coef = jnp.stack([c_self, c_prev, c_next, b_lane]).astype(jnp.float32)
    coef = jnp.pad(coef, ((0, 4), (0, 0)))          # (8, 128)

    # ---- row tiling: pad rows up to a tile multiple, >=2 grid steps when big
    M = B * S
    tokens_per_row = _LANE // F_in                  # 64 tokens per 128-lane row
    rows = -(-M // tokens_per_row)

    tile_rows = max(8, _round_up(tile_rows, 8))
    if rows <= 8:
        tile_r = rows                               # full-extent block (always legal)
        rows_p = rows
    else:
        # 8-aligned tile, capped, and chosen so the grid has >=2 parallel steps.
        tile_r = min(tile_rows, _round_up(-(-rows // 2), 8))
        rows_p = _round_up(rows, tile_r)
    grid = rows_p // tile_r

    # ---- lane-dense view: (rows_p, 128), features interleaved on lanes -----
    x_flat = x1.reshape(M, F_in)
    pad_tokens = rows_p * tokens_per_row - M
    if pad_tokens:
        x_flat = jnp.pad(x_flat, ((0, pad_tokens), (0, 0)))
    x_view = x_flat.reshape(rows_p, _LANE)

    elems = rows_p * _LANE
    cost = pl.CostEstimate(
        flops=6 * elems,                            # 3 mul + 3 add per element
        transcendentals=0,
        bytes_accessed=2 * elems * 4 + 8 * _LANE * 4,
    )

    # VMEM budget: in + out double-buffered (+ tiny coef block). Only raise the
    # scoped limit when the v5e default (16 MiB) would be tight.
    vmem_need = 4 * tile_r * _LANE * 4 + 2 * 8 * _LANE * 4
    cp_kwargs = dict(dimension_semantics=("parallel",))
    if vmem_need > (12 << 20):
        cp_kwargs["vmem_limit_bytes"] = min(vmem_need + (4 << 20), 64 << 20)

    out_view = pl.pallas_call(
        fused_affine_linear_kernel,
        out_shape=jax.ShapeDtypeStruct((rows_p, _LANE), jnp.float32),
        grid=(grid,),
        in_specs=[
            pl.BlockSpec((8, _LANE), lambda i: (0, 0)),        # coefficient rows
            pl.BlockSpec((tile_r, _LANE), lambda i: (i, 0)),   # lane-dense x tile
        ],
        out_specs=pl.BlockSpec((tile_r, _LANE), lambda i: (i, 0)),
        compiler_params=pltpu.CompilerParams(**cp_kwargs),
        cost_estimate=cost,
    )(coef, x_view)

    return out_view.reshape(rows_p * tokens_per_row, F_out)[:M].reshape(B, S, F_out)


if __name__ == "__main__":
    key = jax.random.PRNGKey(0)
    k_x, k_w, k_b, k_cw, k_cb, k_x2, k_x3 = jax.random.split(key, 7)

    # Deterministic synthetic parameters (not a checkpoint load).
    lin_w = jax.random.normal(k_w, (2, 2), dtype=jnp.float32) * 0.5    # (out, in)
    lin_b = jax.random.normal(k_b, (2,), dtype=jnp.float32) * 0.1
    conv_w = jax.random.normal(k_cw, (1, 1, 1, 1), dtype=jnp.float32)  # Conv2d(1,1,(1,1))
    conv_b = jax.random.normal(k_cb, (1,), dtype=jnp.float32) * 0.1

    def ref_forward(x):
        # Plain-JAX reference mirroring the PyTorch forward (v2 is dead code).
        return (conv_w.reshape(()) * x + conv_b.reshape(())) @ lin_w.T + lin_b

    # Original spec shape (1, 2, 2).
    x_spec = jax.random.normal(k_x3, (1, 2, 2), dtype=jnp.float32)
    out_spec = model_forward(x_spec, lin_w, lin_b, conv_w, conv_b)
    jax.block_until_ready(out_spec)
    assert out_spec.shape == (1, 2, 2)
    assert jnp.allclose(out_spec, ref_forward(x_spec), atol=1e-5, rtol=1e-5)

    # Small batch/seq shape consistent with the module (Linear(2, 2) -> last dim 2).
    x_small = jax.random.normal(k_x, (2, 64, 2), dtype=jnp.float32)
    out_small = model_forward(x_small, lin_w, lin_b, conv_w, conv_b)
    jax.block_until_ready(out_small)
    assert out_small.shape == (2, 64, 2)
    assert jnp.allclose(out_small, ref_forward(x_small), atol=1e-5, rtol=1e-5)

    # Larger shape exercising the multi-tile (>=2 parallel grid steps) path.
    x_big = jax.random.normal(k_x2, (4, 4096, 2), dtype=jnp.float32)
    out_big = model_forward(x_big, lin_w, lin_b, conv_w, conv_b)
    jax.block_until_ready(out_big)
    assert jnp.allclose(out_big, ref_forward(x_big), atol=1e-5, rtol=1e-5)

    print("KERNEL_OK")
</pallas_src>

<mosaic_0001>
module attributes {stable_mosaic.version = 11 : i64} {
  func.func @fused_affine_linear_kernel(%arg0: i32, %arg1: memref<8x128xf32, #tpu.memory_space<vmem>>, %arg2: memref<1x128xf32, #tpu.memory_space<vmem>>, %arg3: memref<1x128xf32, #tpu.memory_space<vmem>>) attributes {dimension_semantics = [#tpu.dimension_semantics<parallel>], iteration_bounds = array<i64: 1>, scalar_prefetch = 0 : i64, scratch_operands = 0 : i64, tpu.core_type = #tpu.core_type<tc>, window_params = [{pipeline_mode = #tpu.pipeline_mode<synchronous>, transform_indices = @transform_0, window_bounds = array<i64: 8, 128>}, {transform_indices = @transform_1, window_bounds = array<i64: 1, 128>}, {transform_indices = @transform_2, window_bounds = array<i64: 1, 128>}]} {
    %c0 = arith.constant 0 : index
    %c0_0 = arith.constant 0 : index
    %0 = vector.load %arg2[%c0, %c0_0] : memref<1x128xf32, #tpu.memory_space<vmem>>, vector<1x128xf32>
    %c1_i32 = arith.constant 1 : i32
    %1 = tpu.dynamic_rotate %0 by %c1_i32 dim 1 : vector<1x128xf32>, i32 -> vector<1x128xf32>
    %c127_i32 = arith.constant 127 : i32
    %2 = tpu.dynamic_rotate %0 by %c127_i32 dim 1 : vector<1x128xf32>, i32 -> vector<1x128xf32>
    %c0_1 = arith.constant 0 : index
    %c0_2 = arith.constant 0 : index
    %3 = vector.load %arg1[%c0_1, %c0_2] : memref<8x128xf32, #tpu.memory_space<vmem>>, vector<1x128xf32>
    %c1 = arith.constant 1 : index
    %c0_3 = arith.constant 0 : index
    %4 = vector.load %arg1[%c1, %c0_3] : memref<8x128xf32, #tpu.memory_space<vmem>>, vector<1x128xf32>
    %c2 = arith.constant 2 : index
    %c0_4 = arith.constant 0 : index
    %5 = vector.load %arg1[%c2, %c0_4] : memref<8x128xf32, #tpu.memory_space<vmem>>, vector<1x128xf32>
    %c3 = arith.constant 3 : index
    %c0_5 = arith.constant 0 : index
    %6 = vector.load %arg1[%c3, %c0_5] : memref<8x128xf32, #tpu.memory_space<vmem>>, vector<1x128xf32>
    %7 = arith.mulf %0, %3 : vector<1x128xf32>
    %8 = arith.mulf %1, %4 : vector<1x128xf32>
    %9 = arith.addf %7, %8 : vector<1x128xf32>
    %10 = arith.mulf %2, %5 : vector<1x128xf32>
    %11 = arith.addf %9, %10 : vector<1x128xf32>
    %12 = arith.addf %11, %6 : vector<1x128xf32>
    %c0_6 = arith.constant 0 : index
    %c0_7 = arith.constant 0 : index
    %13 = vector.load %arg3[%c0_6, %c0_7] : memref<1x128xf32, #tpu.memory_space<vmem>>, vector<1x128xf32>
    tpu.vector_store %arg3[%c0_6, %c0_7], %12 {strides = array<i32>} : memref<1x128xf32, #tpu.memory_space<vmem>>, vector<1x128xf32>,
    return
  }
  func.func @transform_0(%arg0: i32) -> (i32, i32) {
    %c0_i32 = arith.constant 0 : i32
    %c0_i32_0 = arith.constant 0 : i32
    %c0_i32_1 = arith.constant 0 : i32
    return %c0_i32, %c0_i32_0 : i32, i32
  }
  func.func @transform_1(%arg0: i32) -> (i32, i32) {
    %c0_i32 = arith.constant 0 : i32
    %c0_i32_0 = arith.constant 0 : i32
    return %arg0, %c0_i32 : i32, i32
  }
  func.func @transform_2(%arg0: i32) -> (i32, i32) {
    %c0_i32 = arith.constant 0 : i32
    %c0_i32_0 = arith.constant 0 : i32
    return %arg0, %c0_i32 : i32, i32
  }
}

</mosaic_0001>

<bundles_post_ra>
// kernel: model_forward.1
= control target key start
LH: loop header
LB: loop body
LE: loop exit
PB: predicated region body
PF: predicated region fallthrough
CT: control target
= control target key end

     0   :  { %s33_s11 = smov 1   ;;  %s34_s12 = smov 127   ;;  %s68_s1 = inlined_call_operand.vmem [shape: f32[1,128], index: 1, kind: input, shape index: {}]   ;;  %s69_s0 = inlined_call_operand.vmem [shape: f32[8,128], index: 0, kind: input, shape index: {}]   ;;  %s70_s2 = inlined_call_operand.vmem [shape: f32[1,128], index: 2, kind: output, shape index: {}]  }
   0x1   :  { %v11_v0 = vld [vmem:[%s68_s1] sm:$0x1]  ;;  %v17_v2 = vld [vmem:[%s69_s0 + $0x1] sm:$0x1]  ;;  %v18_v6 = vld [vmem:[%s69_s0 + $0x2] sm:$0x1] }
   0x2   :  { %12 = vrot.lane.b32.xlu0 %v11_v0, %s33_s11  ;;  %v16_v1 = vld [vmem:[%s69_s0] sm:$0x1]  ;;  %v19_v10 = vld [vmem:[%s69_s0 + $0x3] sm:$0x1] }
   0x3   :  { %v20_v4 = vmul.f32 %v16_v1, %v11_v0 }
   0x6   :  { %14 = vrot.lane.b32.xlu0 %v11_v0, %s34_s12 }
  0x74   :  { %v13_v3 = vpop.permute.xlu0 %12 }
  0x75   :  { %v21_v5 = vmul.f32 %v17_v2, %v13_v3 }
  0x77   :  { %v22_v8 = vadd.f32 %v21_v5, %v20_v4 }
  0x78   :  { %v15_v7 = vpop.permute.xlu0 %14 }
  0x79   :  { %v23_v9 = vmul.f32 %v18_v6, %v15_v7 }
  0x7b   :  { %v24_v11 = vadd.f32 %v23_v9, %v22_v8 }
  0x7d   :  { %v25_v12 = vadd.f32 %v24_v11, %v19_v10 }
  0x7f   :  { %26 = vst [vmem:[%s70_s2] sm:$0x1] %v25_v12 }

</bundles_post_ra>
